<compile_context>
chip_gen: v7x
topology: tpu7x:2x2x1
jax: 0.10.0
libtpu: 0.0.40
codegen_flags: <defaults>
</compile_context>

<pallas_src>
import numpy as np
import jax
import jax.numpy as jnp
from jax import lax
from jax.experimental import pallas as pl
from jax.experimental.pallas import tpu as pltpu

# -----------------------------------------------------------------------------
# Backbone configuration (consistent with the module's prototxt:
# input_dim[1] = 4 channels, 16x16 spatial, batch 2).
# -----------------------------------------------------------------------------
N, C_IN, H1, W1 = 2, 4, 16, 16
C_MID, C_OUT = 8, 16
H2, W2 = H1 // 2, W1 // 2
EPS = 1e-5
KTAP1 = 3 * W1 * C_IN       # 192  (merged-tap contraction for conv 1)
KTAP2 = 3 * W2 * C_MID      # 192  (merged-tap contraction for conv 2)


# -----------------------------------------------------------------------------
# Fused kernel: conv1(+BN) -> maxpool 2x2/s2 -> bias+ReLU -> conv2(+BN)+ReLU.
# One grid step processes one batch element; intermediates never leave VMEM.
# -----------------------------------------------------------------------------
def _fused_backbone_kernel(x_ref, mw_ref, s_ref, b_ref, o_ref, pool_sc, act_sc):
    f32, bf16 = jnp.float32, jnp.bfloat16

    # ---- block 1: 3x3 conv (BN scale folded into the weights) ----------------
    # x_ref holds the H-zero-padded slab (H1+2, W1*C_IN); the three kh taps are
    # plain sublane-offset slices, lane-concatenated into a single K=192 LHS so
    # the whole conv is ONE bf16 MXU matmul with f32 accumulation.
    lhs1 = jnp.concatenate(
        [x_ref[0, pl.ds(0, H1), :],     # row h-1 (zero at h=0, from the pad)
         x_ref[0, pl.ds(1, H1), :],     # row h
         x_ref[0, pl.ds(2, H1), :]],    # row h+1 (zero at h=H1-1)
        axis=1).astype(bf16)            # (16, 192)
    acc1 = jnp.dot(lhs1, mw_ref[0], preferred_element_type=f32)      # (16, 128)

    # ---- 2x2 / stride-2 max pool ---------------------------------------------
    # Rows: stage the raw conv output in VMEM and read even/odd rows back with
    # stride-2 sublane loads (no MXU round trip, no shift matmuls).
    pool_sc[...] = acc1
    rmax = jnp.maximum(pool_sc[pl.ds(0, H2, stride=2), :],
                       pool_sc[pl.ds(1, H2, stride=2), :])           # (8, 128)
    # Columns: 0/1 channel-block selection matmuls compact even/odd w onto 64
    # lanes (lane-strided gathers are not HW native; the MXU is idle here).
    rmax_bf = rmax.astype(bf16)
    pooled = jnp.maximum(
        jnp.dot(rmax_bf, s_ref[0], preferred_element_type=f32),
        jnp.dot(rmax_bf, s_ref[1], preferred_element_type=f32))      # (8, 64)

    # Block-1 bias (conv bias + BN shift) and ReLU, moved after the pool (both
    # commute with the per-channel-constant max window).
    act = jnp.maximum(pooled + b_ref[0:1, 0:W2 * C_MID], 0.0)        # (8, 64)

    # ---- block 2: 3x3 conv (+BN) + bias + ReLU --------------------------------
    # Stage a zero-bordered copy so the three kh taps are again plain slices.
    act_sc[0:1, :] = jnp.zeros((1, W2 * C_MID), f32)
    act_sc[H2 + 1:H2 + 2, :] = jnp.zeros((1, W2 * C_MID), f32)
    act_sc[1:H2 + 1, :] = act
    lhs2 = jnp.concatenate(
        [act_sc[pl.ds(0, H2), :],
         act_sc[pl.ds(1, H2), :],
         act_sc[pl.ds(2, H2), :]],
        axis=1).astype(bf16)            # (8, 192)
    acc2 = jnp.dot(lhs2, mw_ref[1], preferred_element_type=f32)      # (8, 128)
    o_ref[0] = jnp.maximum(acc2 + b_ref[1:2, :], 0.0)                # full (8,128) store


# -----------------------------------------------------------------------------
# Host-side constant builders (run once, outside the kernel).
# -----------------------------------------------------------------------------
def _fold_bn(w_oihw, b, gamma, beta, mean, var, eps=EPS):
    """Fold eval-mode BatchNorm into the conv weight/bias."""
    scale = gamma / np.sqrt(var + eps)
    wf = w_oihw * scale[:, None, None, None]
    bf = b * scale + (beta - mean * scale)
    return wf.astype(np.float32), bf.astype(np.float32)


def _merged_tap_matrix(wf_oihw, W):
    """3x3 conv (pad=1, stride=1) on a (H, W*Cin) row slab as ONE matmul.

    Returns M of shape (3*W*Cin, W*Cout) such that
        conv_row(h) = [x(h-1) | x(h) | x(h+1)] @ M
    with the kw taps AND the W-direction zero padding folded in (out-of-range
    taps have no entry).  BN scale is already folded into wf_oihw.
    """
    cout, cin = wf_oihw.shape[0], wf_oihw.shape[1]
    m = np.zeros((3, W * cin, W * cout), np.float32)
    for kh in range(3):
        for kw in range(3):
            blk = wf_oihw[:, :, kh, kw].T                      # (cin, cout)
            for wo in range(W):
                wi = wo + kw - 1
                if 0 <= wi < W:
                    m[kh, wi * cin:(wi + 1) * cin,
                      wo * cout:(wo + 1) * cout] = blk
    return m.reshape(3 * W * cin, W * cout)


def _pool_lane_select(W_out, C):
    """(2, 2*W_out*C, W_out*C): pick the even / odd w-column C-blocks and
    compact them onto W_out*C lanes (exact in bf16)."""
    s = np.zeros((2, 2 * W_out * C, W_out * C), np.float32)
    for wo in range(W_out):
        for c in range(C):
            s[0, (2 * wo) * C + c, wo * C + c] = 1.0
            s[1, (2 * wo + 1) * C + c, wo * C + c] = 1.0
    return s


# -----------------------------------------------------------------------------
# Parameters (as MTSeqBackbone.__init__ sets them) and constant packing.
# -----------------------------------------------------------------------------
def init_params(key, c_in=C_IN, c_mid=C_MID, c_out=C_OUT):
    k1, k2 = jax.random.split(key)

    def make_block(k, cin, cout):
        w = 0.01 * jax.random.normal(k, (cout, cin, 3, 3), jnp.float32)  # OIHW
        return dict(w=w,
                    b=jnp.zeros((cout,), jnp.float32),
                    gamma=jnp.ones((cout,), jnp.float32),
                    beta=jnp.zeros((cout,), jnp.float32),
                    mean=jnp.zeros((cout,), jnp.float32),
                    var=jnp.ones((cout,), jnp.float32))

    return [make_block(k1, c_in, c_mid), make_block(k2, c_mid, c_out)]


def pack_backbone(params):
    """Fold BN into the convs and pre-build every constant the fused kernel
    needs (3 operands total).  Done once at setup time."""
    p1, p2 = params
    wf1, bf1 = _fold_bn(np.asarray(p1["w"]), np.asarray(p1["b"]),
                        np.asarray(p1["gamma"]), np.asarray(p1["beta"]),
                        np.asarray(p1["mean"]), np.asarray(p1["var"]))
    wf2, bf2 = _fold_bn(np.asarray(p2["w"]), np.asarray(p2["b"]),
                        np.asarray(p2["gamma"]), np.asarray(p2["beta"]),
                        np.asarray(p2["mean"]), np.asarray(p2["var"]))
    m1 = _merged_tap_matrix(wf1, W1)            # (192, 128)
    m2 = _merged_tap_matrix(wf2, W2)            # (192, 128)
    mw = np.stack([m1, m2])                     # (2, 192, 128)
    s = _pool_lane_select(W2, C_MID)            # (2, 128, 64)
    b1_lane = np.tile(bf1, W2)                  # (64,)  pooled lane layout
    b2_lane = np.tile(bf2, W2)                  # (128,)
    b = np.stack([np.concatenate([b1_lane,
                                  np.zeros(W2 * C_OUT - W2 * C_MID, np.float32)]),
                  b2_lane])                     # (2, 128)
    return dict(mw=jnp.asarray(mw, jnp.bfloat16),   # MXU-native weights
                s=jnp.asarray(s, jnp.bfloat16),     # 0/1: exact in bf16
                b=jnp.asarray(b, jnp.float32))


@jax.jit
def mtseq_backbone_forward(x_nchw, packed):
    """Forward of the sequential backbone.  Input NCHW f32, output NCHW f32."""
    # NCHW -> lane-dense row slab (N, H, W*Cin) with channel minor, plus one
    # zero row above/below so the conv-1 row taps are plain sublane slices.
    # TODO(synk): at realistic H/W accept/return the slab (or NHWC) directly to
    # avoid these relayouts around a latency-bound kernel.
    x_slab = jnp.transpose(x_nchw.astype(jnp.float32), (0, 2, 3, 1)).reshape(
        x_nchw.shape[0], H1, W1 * C_IN)
    x_pad = jnp.pad(x_slab, ((0, 0), (1, 1), (0, 0)))

    out_slab = pl.pallas_call(
        _fused_backbone_kernel,
        out_shape=jax.ShapeDtypeStruct((N, H2, W2 * C_OUT), jnp.float32),
        grid=(N,),
        in_specs=[
            pl.BlockSpec((1, H1 + 2, W1 * C_IN), lambda n: (n, 0, 0)),
            pl.BlockSpec((2, KTAP1, W1 * C_MID), lambda n: (0, 0, 0)),
            pl.BlockSpec((2, W1 * C_MID, W2 * C_MID), lambda n: (0, 0, 0)),
            pl.BlockSpec((2, W1 * C_MID), lambda n: (0, 0)),
        ],
        out_specs=pl.BlockSpec((1, H2, W2 * C_OUT), lambda n: (n, 0, 0)),
        scratch_shapes=[
            pltpu.VMEM((H1, W1 * C_MID), jnp.float32),      # raw conv1 out (row pooling)
            pltpu.VMEM((H2 + 2, W2 * C_MID), jnp.float32),  # zero-bordered conv2 input
        ],
        compiler_params=pltpu.CompilerParams(
            dimension_semantics=("parallel",)),
    )(x_pad, packed["mw"], packed["s"], packed["b"])

    # (N, H2, W2*C_OUT) -> NHWC -> NCHW
    return jnp.transpose(out_slab.reshape(N, H2, W2, C_OUT), (0, 3, 1, 2))


# -----------------------------------------------------------------------------
# Pure-JAX f32 reference (silent correctness check, no Pallas).
# -----------------------------------------------------------------------------
def _ref_forward(x_nchw, params):
    x = jnp.transpose(x_nchw.astype(jnp.float32), (0, 2, 3, 1))

    def block(x, p):
        w = jnp.transpose(p["w"], (2, 3, 1, 0))               # OIHW -> HWIO
        dn = lax.conv_dimension_numbers(x.shape, w.shape, ("NHWC", "HWIO", "NHWC"))
        y = lax.conv_general_dilated(x, w, (1, 1), "SAME", dimension_numbers=dn)
        y = y + p["b"][None, None, None, :]
        scale = p["gamma"] / jnp.sqrt(p["var"] + EPS)
        shift = p["beta"] - p["mean"] * scale
        y = y * scale[None, None, None, :] + shift[None, None, None, :]
        return jnp.maximum(y, 0.0)

    x = block(x, params[0])
    x = lax.reduce_window(x, -jnp.inf, lax.max, (1, 2, 2, 1), (1, 2, 2, 1),
                          "VALID")
    x = block(x, params[1])
    return jnp.transpose(x, (0, 3, 1, 2))


if __name__ == "__main__":
    key = jax.random.PRNGKey(0)
    k_x, k_p = jax.random.split(key)

    x = jax.random.normal(k_x, (N, C_IN, H1, W1), jnp.float32)   # NCHW
    params = init_params(k_p)
    packed = pack_backbone(params)

    out = jax.block_until_ready(mtseq_backbone_forward(x, packed))
    ref = jax.block_until_ready(_ref_forward(x, params))

    assert out.shape == (N, C_OUT, H2, W2), out.shape
    # bf16 matmul operands with f32 accumulation -> relaxed tolerance vs the
    # f32 reference (expected abs error ~1e-4 on outputs of magnitude ~5e-3).
    np.testing.assert_allclose(np.asarray(out), np.asarray(ref),
                               rtol=5e-2, atol=5e-4)
    print("KERNEL_OK")
</pallas_src>

<mosaic_0001>
module attributes {stable_mosaic.version = 11 : i64} {
  func.func @_fused_backbone_kernel(%arg0: i32, %arg1: memref<1x18x64xf32, #tpu.memory_space<vmem>>, %arg2: memref<2x192x128xbf16, #tpu.memory_space<vmem>>, %arg3: memref<2x128x64xbf16, #tpu.memory_space<vmem>>, %arg4: memref<2x128xf32, #tpu.memory_space<vmem>>, %arg5: memref<1x8x128xf32, #tpu.memory_space<vmem>>, %arg6: memref<16x128xf32, #tpu.memory_space<vmem>>, %arg7: memref<10x64xf32, #tpu.memory_space<vmem>>) attributes {dimension_semantics = [#tpu.dimension_semantics<parallel>], iteration_bounds = array<i64: 2>, scalar_prefetch = 0 : i64, scratch_operands = 2 : i64, tpu.core_type = #tpu.core_type<tc>, window_params = [{transform_indices = @transform_0, window_bounds = array<i64: 1, 18, 64>}, {pipeline_mode = #tpu.pipeline_mode<synchronous>, transform_indices = @transform_1, window_bounds = array<i64: 2, 192, 128>}, {pipeline_mode = #tpu.pipeline_mode<synchronous>, transform_indices = @transform_2, window_bounds = array<i64: 2, 128, 64>}, {pipeline_mode = #tpu.pipeline_mode<synchronous>, transform_indices = @transform_3, window_bounds = array<i64: 2, 128>}, {transform_indices = @transform_4, window_bounds = array<i64: 1, 8, 128>}]} {
    %c0 = arith.constant 0 : index
    %c0_0 = arith.constant 0 : index
    %c0_1 = arith.constant 0 : index
    %0 = vector.load %arg1[%c0, %c0_0, %c0_1] : memref<1x18x64xf32, #tpu.memory_space<vmem>>, vector<1x16x64xf32>
    %1 = vector.shape_cast %0 : vector<1x16x64xf32> to vector<16x64xf32>
    %c0_2 = arith.constant 0 : index
    %c1 = arith.constant 1 : index
    %c0_3 = arith.constant 0 : index
    %2 = vector.load %arg1[%c0_2, %c1, %c0_3] : memref<1x18x64xf32, #tpu.memory_space<vmem>>, vector<1x16x64xf32>
    %3 = vector.shape_cast %2 : vector<1x16x64xf32> to vector<16x64xf32>
    %c0_4 = arith.constant 0 : index
    %c2 = arith.constant 2 : index
    %c0_5 = arith.constant 0 : index
    %4 = vector.load %arg1[%c0_4, %c2, %c0_5] : memref<1x18x64xf32, #tpu.memory_space<vmem>>, vector<1x16x64xf32>
    %5 = vector.shape_cast %4 : vector<1x16x64xf32> to vector<16x64xf32>
    %6 = tpu.concatenate %1, %3, %5 in 1 : vector<16x64xf32>, vector<16x64xf32>, vector<16x64xf32> -> vector<16x192xf32>
    %7 = arith.truncf %6 : vector<16x192xf32> to vector<16x192xbf16>
    %c0_6 = arith.constant 0 : index
    %c0_7 = arith.constant 0 : index
    %c0_8 = arith.constant 0 : index
    %8 = vector.load %arg2[%c0_6, %c0_7, %c0_8] : memref<2x192x128xbf16, #tpu.memory_space<vmem>>, vector<1x192x128xbf16>
    %9 = vector.shape_cast %8 : vector<1x192x128xbf16> to vector<192x128xbf16>
    %cst = arith.constant dense<0.000000e+00> : vector<16x128xf32>
    %10 = tpu.matmul %7, %9, %cst {dimension_numbers = #tpu.dot_dimension_numbers<[1], [0], [0], [1], [0, 0, 1, 1], [], []>} : vector<16x192xbf16>, vector<192x128xbf16>, vector<16x128xf32> -> vector<16x128xf32>
    %c0_9 = arith.constant 0 : index
    %c0_10 = arith.constant 0 : index
    %11 = vector.load %arg6[%c0_9, %c0_10] : memref<16x128xf32, #tpu.memory_space<vmem>>, vector<16x128xf32>
    tpu.vector_store %arg6[%c0_9, %c0_10], %10 {strides = array<i32>} : memref<16x128xf32, #tpu.memory_space<vmem>>, vector<16x128xf32>,
    %c0_11 = arith.constant 0 : index
    %c0_12 = arith.constant 0 : index
    %12 = tpu.strided_load %arg6[%c0_11, %c0_12] {strides = array<i32: 2, 1>} : memref<16x128xf32, #tpu.memory_space<vmem>>, vector<8x128xf32>
    %c1_13 = arith.constant 1 : index
    %c0_14 = arith.constant 0 : index
    %13 = tpu.strided_load %arg6[%c1_13, %c0_14] {strides = array<i32: 2, 1>} : memref<16x128xf32, #tpu.memory_space<vmem>>, vector<8x128xf32>
    %14 = arith.maximumf %12, %13 : vector<8x128xf32>
    %15 = arith.truncf %14 : vector<8x128xf32> to vector<8x128xbf16>
    %c0_15 = arith.constant 0 : index
    %c0_16 = arith.constant 0 : index
    %c0_17 = arith.constant 0 : index
    %16 = vector.load %arg3[%c0_15, %c0_16, %c0_17] : memref<2x128x64xbf16, #tpu.memory_space<vmem>>, vector<1x128x64xbf16>
    %17 = vector.shape_cast %16 : vector<1x128x64xbf16> to vector<128x64xbf16>
    %cst_18 = arith.constant dense<0.000000e+00> : vector<8x64xf32>
    %18 = tpu.matmul %15, %17, %cst_18 {dimension_numbers = #tpu.dot_dimension_numbers<[1], [0], [0], [1], [0, 0, 1, 1], [], []>} : vector<8x128xbf16>, vector<128x64xbf16>, vector<8x64xf32> -> vector<8x64xf32>
    %c1_19 = arith.constant 1 : index
    %c0_20 = arith.constant 0 : index
    %c0_21 = arith.constant 0 : index
    %19 = vector.load %arg3[%c1_19, %c0_20, %c0_21] : memref<2x128x64xbf16, #tpu.memory_space<vmem>>, vector<1x128x64xbf16>
    %20 = vector.shape_cast %19 : vector<1x128x64xbf16> to vector<128x64xbf16>
    %cst_22 = arith.constant dense<0.000000e+00> : vector<8x64xf32>
    %21 = tpu.matmul %15, %20, %cst_22 {dimension_numbers = #tpu.dot_dimension_numbers<[1], [0], [0], [1], [0, 0, 1, 1], [], []>} : vector<8x128xbf16>, vector<128x64xbf16>, vector<8x64xf32> -> vector<8x64xf32>
    %22 = arith.maximumf %18, %21 : vector<8x64xf32>
    %c0_23 = arith.constant 0 : index
    %c0_24 = arith.constant 0 : index
    %23 = vector.load %arg4[%c0_23, %c0_24] : memref<2x128xf32, #tpu.memory_space<vmem>>, vector<1x64xf32>
    %24 = vector.broadcast %23 : vector<1x64xf32> to vector<8x64xf32>
    %25 = arith.addf %22, %24 : vector<8x64xf32>
    %cst_25 = arith.constant 0.000000e+00 : f32
    %26 = vector.broadcast %cst_25 : f32 to vector<8x64xf32>
    %27 = arith.maximumf %25, %26 : vector<8x64xf32>
    %cst_26 = arith.constant 0.000000e+00 : f32
    %28 = vector.broadcast %cst_26 : f32 to vector<1x64xf32>
    %c0_27 = arith.constant 0 : index
    %c0_28 = arith.constant 0 : index
    %29 = vector.load %arg7[%c0_27, %c0_28] : memref<10x64xf32, #tpu.memory_space<vmem>>, vector<1x64xf32>
    tpu.vector_store %arg7[%c0_27, %c0_28], %28 {strides = array<i32>} : memref<10x64xf32, #tpu.memory_space<vmem>>, vector<1x64xf32>,
    %cst_29 = arith.constant 0.000000e+00 : f32
    %30 = vector.broadcast %cst_29 : f32 to vector<1x64xf32>
    %c9 = arith.constant 9 : index
    %c0_30 = arith.constant 0 : index
    %31 = vector.load %arg7[%c9, %c0_30] : memref<10x64xf32, #tpu.memory_space<vmem>>, vector<1x64xf32>
    tpu.vector_store %arg7[%c9, %c0_30], %30 {strides = array<i32>} : memref<10x64xf32, #tpu.memory_space<vmem>>, vector<1x64xf32>,
    %c1_31 = arith.constant 1 : index
    %c0_32 = arith.constant 0 : index
    %32 = vector.load %arg7[%c1_31, %c0_32] : memref<10x64xf32, #tpu.memory_space<vmem>>, vector<8x64xf32>
    tpu.vector_store %arg7[%c1_31, %c0_32], %27 {strides = array<i32>} : memref<10x64xf32, #tpu.memory_space<vmem>>, vector<8x64xf32>,
    %c0_33 = arith.constant 0 : index
    %c0_34 = arith.constant 0 : index
    %33 = vector.load %arg7[%c0_33, %c0_34] : memref<10x64xf32, #tpu.memory_space<vmem>>, vector<8x64xf32>
    %c1_35 = arith.constant 1 : index
    %c0_36 = arith.constant 0 : index
    %34 = vector.load %arg7[%c1_35, %c0_36] : memref<10x64xf32, #tpu.memory_space<vmem>>, vector<8x64xf32>
    %c2_37 = arith.constant 2 : index
    %c0_38 = arith.constant 0 : index
    %35 = vector.load %arg7[%c2_37, %c0_38] : memref<10x64xf32, #tpu.memory_space<vmem>>, vector<8x64xf32>
    %36 = tpu.concatenate %33, %34, %35 in 1 : vector<8x64xf32>, vector<8x64xf32>, vector<8x64xf32> -> vector<8x192xf32>
    %37 = arith.truncf %36 : vector<8x192xf32> to vector<8x192xbf16>
    %c1_39 = arith.constant 1 : index
    %c0_40 = arith.constant 0 : index
    %c0_41 = arith.constant 0 : index
    %38 = vector.load %arg2[%c1_39, %c0_40, %c0_41] : memref<2x192x128xbf16, #tpu.memory_space<vmem>>, vector<1x192x128xbf16>
    %39 = vector.shape_cast %38 : vector<1x192x128xbf16> to vector<192x128xbf16>
    %cst_42 = arith.constant dense<0.000000e+00> : vector<8x128xf32>
    %40 = tpu.matmul %37, %39, %cst_42 {dimension_numbers = #tpu.dot_dimension_numbers<[1], [0], [0], [1], [0, 0, 1, 1], [], []>} : vector<8x192xbf16>, vector<192x128xbf16>, vector<8x128xf32> -> vector<8x128xf32>
    %c1_43 = arith.constant 1 : index
    %c0_44 = arith.constant 0 : index
    %41 = vector.load %arg4[%c1_43, %c0_44] : memref<2x128xf32, #tpu.memory_space<vmem>>, vector<1x128xf32>
    %42 = vector.broadcast %41 : vector<1x128xf32> to vector<8x128xf32>
    %43 = arith.addf %40, %42 : vector<8x128xf32>
    %cst_45 = arith.constant 0.000000e+00 : f32
    %44 = vector.broadcast %cst_45 : f32 to vector<8x128xf32>
    %45 = arith.maximumf %43, %44 : vector<8x128xf32>
    %c0_46 = arith.constant 0 : index
    %c0_47 = arith.constant 0 : index
    %c0_48 = arith.constant 0 : index
    %46 = vector.load %arg5[%c0_46, %c0_47, %c0_48] : memref<1x8x128xf32, #tpu.memory_space<vmem>>, vector<1x8x128xf32>
    %47 = vector.shape_cast %46 : vector<1x8x128xf32> to vector<8x128xf32>
    %48 = vector.shape_cast %45 : vector<8x128xf32> to vector<1x8x128xf32>
    tpu.vector_store %arg5[%c0_46, %c0_47, %c0_48], %48 {strides = array<i32>} : memref<1x8x128xf32, #tpu.memory_space<vmem>>, vector<1x8x128xf32>,
    return
  }
  func.func @transform_0(%arg0: i32) -> (i32, i32, i32) {
    %c0_i32 = arith.constant 0 : i32
    %c0_i32_0 = arith.constant 0 : i32
    %c0_i32_1 = arith.constant 0 : i32
    return %arg0, %c0_i32, %c0_i32_0 : i32, i32, i32
  }
  func.func @transform_1(%arg0: i32) -> (i32, i32, i32) {
    %c0_i32 = arith.constant 0 : i32
    %c0_i32_0 = arith.constant 0 : i32
    %c0_i32_1 = arith.constant 0 : i32
    %c0_i32_2 = arith.constant 0 : i32
    return %c0_i32, %c0_i32_0, %c0_i32_1 : i32, i32, i32
  }
  func.func @transform_2(%arg0: i32) -> (i32, i32, i32) {
    %c0_i32 = arith.constant 0 : i32
    %c0_i32_0 = arith.constant 0 : i32
    %c0_i32_1 = arith.constant 0 : i32
    %c0_i32_2 = arith.constant 0 : i32
    return %c0_i32, %c0_i32_0, %c0_i32_1 : i32, i32, i32
  }
  func.func @transform_3(%arg0: i32) -> (i32, i32) {
    %c0_i32 = arith.constant 0 : i32
    %c0_i32_0 = arith.constant 0 : i32
    %c0_i32_1 = arith.constant 0 : i32
    return %c0_i32, %c0_i32_0 : i32, i32
  }
  func.func @transform_4(%arg0: i32) -> (i32, i32, i32) {
    %c0_i32 = arith.constant 0 : i32
    %c0_i32_0 = arith.constant 0 : i32
    %c0_i32_1 = arith.constant 0 : i32
    return %arg0, %c0_i32, %c0_i32_0 : i32, i32, i32
  }
}

</mosaic_0001>

<bundles_post_ra>
// kernel: mtseq_backbone_forward.1
= control target key start
LH: loop header
LB: loop body
LE: loop exit
PB: predicated region body
PF: predicated region fallthrough
CT: control target
= control target key end

     0   :  { %s1040_s15 = smov 0   ;;  %s1249_s0 = inlined_call_operand.vmem [shape: f32[2,18,64], index: 0, kind: input, shape index: {}]   ;;  %s1250_s1 = inlined_call_operand.vmem [shape: bf16[2,192,128], index: 1, kind: input, shape index: {}]   ;;  %s1251_s2 = inlined_call_operand.vmem [shape: bf16[2,128,64], index: 2, kind: input, shape index: {}]   ;;  %s1252_s3 = inlined_call_operand.vmem [shape: f32[2,128], index: 3, kind: input, shape index: {}]   ;;  %s1253_s4 = inlined_call_operand.vmem [shape: f32[2,8,128], index: 4, kind: output, shape index: {}]  }
   0x1 LB: > { %s794_s16 = sadd.s32 4294967295, %s1009_s15   ;;  %p798_p0 = scmp.ge.s32.totalorder %s1009_s15, 1  ;;  %s1009_s15 = sphi %s1040_s15, %s14_s15  }
   0x2   : > { %p162_p1 = scmp.lt.s32.totalorder %s1009_s15, 3 }
   0x4   : > { %p163_p2 = pnand %p798_p0, %p162_p1 }
   0x5   : > { %p187_p3 = scmp.lt.s32.totalorder (!%p163_p2), %s794_s16, 1  ;;  %v963_v0 = vld [vmem:[%s1250_s1] sm:$0xff] (!%p163_p2)   ;;  %v1011_v1 = vmov (!%p163_p2), 0   ;;  %v964_v2 = vld [vmem:[%s1250_s1 + $0x8] sm:$0xff] (!%p163_p2)   ;;  %v965_v3 = vld [vmem:[%s1250_s1 + $0x10] sm:$0xff] (!%p163_p2)   ;;  %v1012_v4 = vmov (!%p163_p2), 0.0  }
   0x6   : > { %166 = sbr.rel (%p163_p2) target bundleno = 959 (0x3bf), region = 36  ;;  %315 = vmatprep.subr.bf16.mxu0 (!%p163_p2), %v1011_v1  ;;  %905 = vmatprep.subr.bf16.mxu1 (!%p163_p2), %v1012_v4  ;;  %s1013_s27 = smov (!%p163_p2), 64   ;;  %v966_v8 = vld [vmem:[%s1250_s1 + $0x18] sm:$0xff] (!%p163_p2)   ;;  %v967_v11 = vld [vmem:[%s1250_s1 + $0x20] sm:$0xff] (!%p163_p2)   ;;  %vm211_vm0 = vcmask (!%p163_p2), 523264   ;;  %v976_v14 = vld [vmem:[%s1251_s2 + $0x8] sm:$0xff] (!%p163_p2)  }
   0x7   : > { %316 = vmatpush1.bf16.msra.mxu0 (!%p163_p2), %v963_v0  ;;  %v975_v13 = vld [vmem:[%s1251_s2] sm:$0xff] (!%p163_p2)   ;;  %v968_v15 = vld [vmem:[%s1250_s1 + $0x28] sm:$0xff] (!%p163_p2)   ;;  %v977_v16 = vld [vmem:[%s1251_s2 + $0x10] sm:$0xff] (!%p163_p2)   ;;  %vm1014_vm1 = vmmov (!%p163_p2), 0   ;;  %vm580_vm2 = vcmask (!%p163_p2), 516096  }
   0x8   : > { %317 = vmatprep.subr.bf16.mxu0 (!%p163_p2), %v1011_v1  ;;  %906 = vmatpush3.bf16.msra.mxu1 (!%p163_p2), %v975_v13  ;;  %v969_v17 = vld [vmem:[%s1250_s1 + $0x30] sm:$0xff] (!%p163_p2)   ;;  %v978_v18 = vld [vmem:[%s1251_s2 + $0x18] sm:$0xff] (!%p163_p2)   ;;  %v979_v20 = vld [vmem:[%s1251_s2 + $0x20] sm:$0xff] (!%p163_p2)   ;;  %582 = vst.msk [vmem:[#allocation3 + $0x9] sm:$0x1] (!%p163_p2), %vm580_vm2, %v1012_v4 }
   0x9   : > { %907 = vmatprep.subr.bf16.mxu1 (!%p163_p2), %v1012_v4  ;;  %v970_v19 = vld [vmem:[%s1250_s1 + $0x38] sm:$0xff] (!%p163_p2)   ;;  %v971_v21 = vld [vmem:[%s1250_s1 + $0x40] sm:$0xff] (!%p163_p2)   ;;  %v972_v22 = vld [vmem:[%s1250_s1 + $0x48] sm:$0xff] (!%p163_p2)   ;;  %921 = vmatprep.mubr.msk.bf16.mxu1 (!%p163_p2), %vm1014_vm1, %v1012_v4  ;;  %581 = vst.msk [vmem:[#allocation3] sm:$0x1] (!%p163_p2), %vm580_vm2, %v1012_v4 }
   0xa   : > { %v973_v23 = vld [vmem:[%s1250_s1 + $0x50] sm:$0xff] (!%p163_p2)   ;;  %v974_v24 = vld [vmem:[%s1250_s1 + $0x58] sm:$0xff] (!%p163_p2)   ;;  %v980_v33 = vld [vmem:[%s1251_s2 + $0x28] sm:$0xff] (!%p163_p2)  }
   0xb   : > { %318 = vmatpush1.bf16.msra.mxu0 (!%p163_p2), %v964_v2  ;;  %v981_v34 = vld [vmem:[%s1251_s2 + $0x30] sm:$0xff] (!%p163_p2)   ;;  %v982_v35 = vld [vmem:[%s1251_s2 + $0x38] sm:$0xff] (!%p163_p2)   ;;  %v983_v43 = vld [vmem:[%s1251_s2 + $0x40] sm:$0xff] (!%p163_p2)  }
   0xc   : > { %319 = vmatprep.subr.bf16.mxu0 (!%p163_p2), %v1011_v1  ;;  %908 = vmatpush3.bf16.msra.mxu1 (!%p163_p2), %v976_v14  ;;  %v984_v45 = vld [vmem:[%s1251_s2 + $0x48] sm:$0xff] (!%p163_p2)   ;;  %v985_v46 = vld [vmem:[%s1251_s2 + $0x50] sm:$0xff] (!%p163_p2)   ;;  %v986_v47 = vld [vmem:[%s1251_s2 + $0x58] sm:$0xff] (!%p163_p2)  }
   0xd   : > { %s1255_s16 = smov (!%p187_p3, %s794_s16), 1  ;;  %909 = vmatprep.subr.bf16.mxu1 %v1012_v4  ;;  %v987_v48 = vld [vmem:[%s1251_s2 + $0x60] sm:$0xff]   ;;  %v988_v49 = vld [vmem:[%s1251_s2 + $0x68] sm:$0xff]   ;;  %v989_v50 = vld [vmem:[%s1251_s2 + $0x70] sm:$0xff]  }
   0xe   : > { %s945_s21 = smul.u32 24, %s1255_s16  ;;  %v990_v51 = vld [vmem:[%s1251_s2 + $0x78] sm:$0xff]   ;;  %v991_v52 = vld [vmem:[%s1250_s1 + $0x60] sm:$0xff]   ;;  %v992_v53 = vld [vmem:[%s1250_s1 + $0x68] sm:$0xff]  }
   0xf   : > { %320 = vmatpush1.bf16.msra.mxu0 %v965_v3  ;;  %v993_v54 = vld [vmem:[%s1250_s1 + $0x70] sm:$0xff]   ;;  %v994_v55 = vld [vmem:[%s1250_s1 + $0x78] sm:$0xff]   ;;  %v995_v56 = vld [vmem:[%s1250_s1 + $0x80] sm:$0xff]  }
  0x10   : > { %s1062_s24 = scalar_lea.vmem %s1249_s0, %s945_s21  ;;  %321 = vmatprep.subr.bf16.mxu0 %v1011_v1  ;;  %910 = vmatpush3.bf16.msra.mxu1 %v977_v16  ;;  %v996_v57 = vld [vmem:[%s1250_s1 + $0x88] sm:$0xff]   ;;  %v997_v58 = vld [vmem:[%s1250_s1 + $0x90] sm:$0xff]   ;;  %v998_v59 = vld [vmem:[%s1250_s1 + $0x98] sm:$0xff]  }
  0x11   : > { %v199_v5 = vld [vmem:[%s1062_s24 + $0x1] sm:$0xff]  ;;  %v200_v6 = vld [vmem:[%s1062_s24 + $0x9] sm:$0xff]  ;;  %911 = vmatprep.subr.bf16.mxu1 %v1012_v4 }
  0x12   : > { %v958_v7 = vpack.i.bf16 %v200_v6, %v199_v5  ;;  %v201_v9 = vld [vmem:[%s1062_s24 + $0x2] sm:$0xff]  ;;  %v202_v10 = vld [vmem:[%s1062_s24 + $0xa] sm:$0xff]  ;;  %v846_v5 = vld [vmem:[%s1252_s3] ss:$0 sm:$0xff] }
  0x13   : > { %322 = vmatpush1.bf16.msra.mxu0 %v966_v8  ;;  %v215_v12 = vpack.c.bf16 %v202_v10, %v201_v9  ;;  %v197_v26 = vld [vmem:[%s1062_s24] sm:$0xff]  ;;  %v198_v27 = vld [vmem:[%s1062_s24 + $0x8] sm:$0xff]  ;;  %v1001_v62 = vld [vmem:[%s1250_s1 + $0xb0] sm:$0xff]   ;;  %s800_s24 = sshll.u32 %s1255_s16, 3 }
  0x14   : > { %959 = vrot.lane.b32.xlu0 %v958_v7, %s1013_s27  ;;  %323 = vmatprep.subr.bf16.mxu0 %v1011_v1  ;;  %v999_v60 = vld [vmem:[%s1250_s1 + $0xa0] sm:$0xff]   ;;  %v1000_v61 = vld [vmem:[%s1250_s1 + $0xa8] sm:$0xff]   ;;  %v1002_v6 = vld [vmem:[%s1250_s1 + $0xb8] sm:$0xff]  }
  0x15   : > { %813 = vmatprep.mubr.msk.bf16.mxu0 %vm211_vm0, %v215_v12  ;;  %912 = vmatpush3.bf16.msra.mxu1 %v978_v18 }
  0x16   : > { %913 = vmatprep.subr.bf16.mxu1 %v1012_v4 }
  0x17   : > { %324 = vmatpush1.bf16.msra.mxu0 %v967_v11 }
  0x18   : > { %325 = vmatprep.subr.bf16.mxu0 %v1011_v1 }
  0x19   : > { %914 = vmatpush3.bf16.msra.mxu1 %v979_v20 }
  0x1a   : > { %915 = vmatprep.subr.bf16.mxu1 %v1012_v4 }
  0x1b   : > { %326 = vmatpush1.bf16.msra.mxu0 %v968_v15 }
  0x1c   : > { %327 = vmatprep.subr.bf16.mxu0 %v1011_v1 }
  0x1d   : > { %916 = vmatpush3.bf16.msra.mxu1 %v980_v33 }
  0x1e   : > { %917 = vmatprep.subr.bf16.mxu1 %v1012_v4 }
  0x1f   : > { %328 = vmatpush1.bf16.msra.mxu0 %v969_v17 }
  0x20   : > { %329 = vmatprep.subr.bf16.mxu0 %v1011_v1 }
  0x21   : > { %918 = vmatpush3.bf16.msra.mxu1 %v981_v34 }
  0x22   : > { %919 = vmatprep.subr.bf16.mxu1 %v1012_v4 }
  0x23   : > { %330 = vmatpush1.bf16.msra.mxu0 %v970_v19  ;;  %v871_v19 = vld [vmem:[%s1252_s3 + $0x1] ss:$0 sm:$0xff] }
  0x24   : > { %331 = vmatprep.subr.bf16.mxu0 %v1011_v1 }
  0x25   : > { %920 = vmatpush3.bf16.msra.mxu1 %v982_v35 }
  0x26   : > { %925 = vmatprep.subr.bf16.mxu1 %v1012_v4 }
  0x27   : > { %332 = vmatpush1.bf16.msra.mxu0 %v971_v21 }
  0x28   : > { %333 = vmatprep.subr.bf16.mxu0 %v1011_v1 }
  0x2b   : > { %334 = vmatpush1.bf16.msra.mxu0 %v972_v22 }
  0x2c   : > { %335 = vmatprep.subr.bf16.mxu0 %v1011_v1 }
  0x2f   : > { %336 = vmatpush1.bf16.msra.mxu0 %v973_v23 }
  0x30   : > { %337 = vmatprep.subr.bf16.mxu0 %v1011_v1 }
  0x33   : > { %338 = vmatpush1.bf16.msra.mxu0 %v974_v24 }
  0x34   : > { %699 = vmatprep.subr.bf16.mxu0 %v1011_v1 }
  0x86   : > { %v960_v25 = vpop.permute.xlu0 %959 }
  0x87   : > { %v962_v28 = vunpack.i.h.bf16 %v960_v25  ;;  %v961_v29 = vunpack.i.l.bf16 %v960_v25 }
  0x89   : > { %v212_v30 = vsel %vm211_vm0, %v197_v26, %v961_v29  ;;  %v213_v31 = vsel %vm211_vm0, %v198_v27, %v962_v28 }
  0x8a   : > { %v214_v32 = vpack.c.bf16 %v213_v31, %v212_v30 }
  0x8c   : > { %348 = vmatmul.mubr.bf16.vlgmr.msra.gmra.mrb[0].mxu0 %v214_v32 }
  0x8d   : > { %700 = vmatpush1.bf16.msra.mxu0 %v991_v52 }
  0x8e   : > { %701 = vmatprep.subr.bf16.mxu0 %v1011_v1 }
  0x91   : > { %702 = vmatpush1.bf16.msra.mxu0 %v992_v53 }
  0x92   : > { %703 = vmatprep.subr.bf16.mxu0 %v1011_v1 }
  0x95   : > { %704 = vmatpush1.bf16.msra.mxu0 %v993_v54 }
  0x96   : > { %705 = vmatprep.subr.bf16.mxu0 %v1011_v1 }
  0x99   : > { %706 = vmatpush1.bf16.msra.mxu0 %v994_v55 }
  0x9a   : > { %707 = vmatprep.subr.bf16.mxu0 %v1011_v1 }
  0x9d   : > { %708 = vmatpush1.bf16.msra.mxu0 %v995_v56 }
  0x9e   : > { %709 = vmatprep.subr.bf16.mxu0 %v1011_v1 }
  0xa1   : > { %710 = vmatpush1.bf16.msra.mxu0 %v996_v57 }
  0xa2   : > { %711 = vmatprep.subr.bf16.mxu0 %v1011_v1 }
  0xa5   : > { %712 = vmatpush1.bf16.msra.mxu0 %v997_v58 }
  0xa6   : > { %713 = vmatprep.subr.bf16.mxu0 %v1011_v1 }
  0xa9   : > { %714 = vmatpush1.bf16.msra.mxu0 %v998_v59 }
  0xaa   : > { %715 = vmatprep.subr.bf16.mxu0 %v1011_v1 }
  0xad   : > { %716 = vmatpush1.bf16.msra.mxu0 %v999_v60 }
  0xae   : > { %717 = vmatprep.subr.bf16.mxu0 %v1011_v1 }
  0xb1   : > { %718 = vmatpush1.bf16.msra.mxu0 %v1000_v61 }
  0xb2   : > { %719 = vmatprep.subr.bf16.mxu0 %v1011_v1 }
  0xb5   : > { %720 = vmatpush1.bf16.msra.mxu0 %v1001_v62 }
  0xb6   : > { %721 = vmatprep.subr.bf16.mxu0 %v1011_v1 }
  0xb9   : > { %722 = vmatpush1.bf16.msra.mxu0 %v1002_v6 }
 0x15f   : > { %v349_v36 = vpop.f32.mrb[0].mxu0 }
 0x160   : > { %356 = vst [vmem:[#allocation2] sm:$0xff] %v349_v36  ;;  %v351_v37 = vpop.f32.mrb[1].mxu0 }
 0x161   : > { %v352_v38 = vpop.f32.mrb[2].mxu0 }
 0x162   : > { %357 = vst [vmem:[#allocation2 + $0x8] sm:$0xff] %v352_v38  ;;  %v354_v39 = vpop.f32.mrb[3].mxu0 }
 0x169   : > { %v358_v40 = vld [vmem:[#allocation2] ss:$2 sm:$0xff]  ;;  %v360_v41 = vld [vmem:[#allocation2 + $0x1] ss:$2 sm:$0xff] }
 0x16a   : > { %v361_v42 = vmax.f32 %v358_v40, %v360_v41 }
 0x16c   : > { %v362_v44 = vpack.c.bf16 %v361_v42, %v361_v42 }
 0x16e   : > { %922 = vmatmul.mubr.bf16.vlgmr.msra.gmra.mrb[0].mxu1 %v362_v44 }
 0x16f   : > { %926 = vmatpush3.bf16.msra.mxu1 %v983_v43  ;;  %941 = vmatprep.mubr.msk.bf16.mxu1 %vm1014_vm1, %v1012_v4 }
 0x170   : > { %927 = vmatprep.subr.bf16.mxu1 %v1012_v4 }
 0x173   : > { %928 = vmatpush3.bf16.msra.mxu1 %v984_v45 }
 0x174   : > { %929 = vmatprep.subr.bf16.mxu1 %v1012_v4 }
 0x177   : > { %930 = vmatpush3.bf16.msra.mxu1 %v985_v46 }
 0x178   : > { %931 = vmatprep.subr.bf16.mxu1 %v1012_v4 }
 0x17b   : > { %932 = vmatpush3.bf16.msra.mxu1 %v986_v47 }
 0x17c   : > { %933 = vmatprep.subr.bf16.mxu1 %v1012_v4 }
 0x17f   : > { %934 = vmatpush3.bf16.msra.mxu1 %v987_v48 }
 0x180   : > { %935 = vmatprep.subr.bf16.mxu1 %v1012_v4 }
 0x183   : > { %936 = vmatpush3.bf16.msra.mxu1 %v988_v49 }
 0x184   : > { %937 = vmatprep.subr.bf16.mxu1 %v1012_v4 }
 0x187   : > { %938 = vmatpush3.bf16.msra.mxu1 %v989_v50 }
 0x188   : > { %939 = vmatprep.subr.bf16.mxu1 %v1012_v4 }
 0x18b   : > { %940 = vmatpush3.bf16.msra.mxu1 %v990_v51 }
 0x18e   : > { %942 = vmatmul.mubr.bf16.vlgmr.msra.gmra.mrb[4].mxu1 %v362_v44 }
 0x241   : > { %v461_v63 = vpop.f32.mrb[0].mxu1 }
 0x242   : > { %v923_v0 = vpop.f32.mrb[1].mxu1 }
 0x243   : > { %v464_v2 = vpop.f32.mrb[2].mxu1 }
 0x244   : > { %v924_v3 = vpop.f32.mrb[3].mxu1 }
 0x261   : > { %v566_v4 = vpop.f32.mrb[4].mxu1 }
 0x262   : > { %v572_v7 = vmax.f32 %v461_v63, %v566_v4  ;;  %v943_v8 = vpop.f32.mrb[5].mxu1 }
 0x263   : > { %v569_v9 = vpop.f32.mrb[6].mxu1 }
 0x264   : > { %v578_v10 = vadd.f32 %v846_v5, %v572_v7  ;;  %v944_v1 = vpop.f32.mrb[7].mxu1 }
 0x266   : > { %v579_v11 = vmax.f32 %v578_v10, 0.0 }
 0x268   : > { %583 = vst.msk [vmem:[#allocation3 + $0x1] sm:$0xff] %vm211_vm0, %v579_v11 }
 0x26f   : > { %v585_v12 = vld [vmem:[#allocation3 + $0x1] sm:$0xff] }
 0x270   : > { %v586_v13 = vld [vmem:[#allocation3 + $0x2] sm:$0xff]  ;;  %588 = vrot.lane.b32.xlu0 %v585_v12, %s1013_s27  ;;  %s195_s27 = scalar_lea.vmem %s1253_s4, %s800_s24 }
 0x271   : > { %v593_v14 = vpack.c.bf16 %v586_v13, %v586_v13  ;;  %v584_v16 = vld [vmem:[#allocation3] sm:$0xff] }
 0x273   : > { %884 = vmatprep.mubr.msk.bf16.mxu0 %vm211_vm0, %v593_v14 }
 0x2e2   : > { %v589_v15 = vpop.permute.xlu0 %588 }
 0x2e3   : > { %v591_v17 = vsel %vm211_vm0, %v584_v16, %v589_v15 }
 0x2e4   : > { %v592_v18 = vpack.c.bf16 %v591_v17, %v591_v17 }
 0x2e6   : > { %732 = vmatmul.mubr.bf16.vlgmr.msra.gmra.mrb[4].mxu0 %v592_v18 }
 0x3b9   : > { %v733_v20 = vpop.f32.mrb[4].mxu0 }
 0x3ba   : > { %v734_v21 = vadd.f32 %v871_v19, %v733_v20  ;;  %v735_v22 = vpop.f32.mrb[5].mxu0 }
 0x3bb   : > { %v736_v23 = vpop.f32.mrb[6].mxu0 }
 0x3bc   : > { %v739_v24 = vmax.f32 %v734_v21, 0.0  ;;  %v737_v25 = vpop.f32.mrb[7].mxu0 }
 0x3be   : > { %740 = vst [vmem:[%s195_s27] sm:$0xff] %v739_v24 }
 0x3bf PF: > { %s14_s15 = sadd.s32 1, %s1009_s15  }
 0x3c0   : > { %p11_p4 = scmp.ge.s32.totalorder %s14_s15, 4  }
 0x3c2   :  { %13 = sbr.rel (!%p11_p4) target bundleno = 1 (0x1), region = 69 }

</bundles_post_ra>
